<compile_context>
chip_gen: v5e
topology: v5e:2x2
jax: 0.10.0
libtpu: 0.0.40
codegen_flags: <defaults>
</compile_context>

<pallas_src>
import functools

import numpy as np

import jax
import jax.numpy as jnp
from jax.experimental import pallas as pl
from jax.experimental.pallas import tpu as pltpu

_BF16 = jnp.bfloat16
_F32 = jnp.float32

# Fixed ordering of the packed parameter / constant arrays fed to the kernel.
_PARAM_NAMES = (
    "block1_w1", "block1_b1", "block1_w2", "block1_b2",
    "block2_w1", "block2_b1", "block2_w2", "block2_b2",
    "block3_w1", "block3_b1", "block3_w2", "block3_b2",
    "block4_w1", "block4_b1", "block4_w2", "block4_b2",
    "block7_w1a", "block7_w1b", "block7_b1", "block7_w2", "block7_b2",
    "block8_w1a", "block8_w1b", "block8_b1", "block8_w2", "block8_b2",
    "block9_w1a", "block9_w1b", "block9_b1", "block9_w2", "block9_b2",
    "up2_w", "up2_b", "up3_w", "up3_b", "up4_w", "up4_b",
    "conv9_w", "conv9_b",
    "pool1_s", "pool2_s", "pool3_s",
    "up2_e", "up3_e", "up4_e",
)


def _full_spec(shape):
    return pl.BlockSpec(shape, lambda i: (0,) * len(shape))


# ---------------------------------------------------------------------------
# The fused UNet2DRes kernel (everything in VMEM)
# ---------------------------------------------------------------------------
def _unet2dres_kernel(*refs, names, H, W, roll_matches_jnp):
    x_ref = refs[0]
    out_ref = refs[-1]
    p = dict(zip(names, refs[1:-1]))

    def shift_rows(a, s):
        # t[m] = a[(m + s) % M] ; wrapped rows are always masked by callers.
        m = a.shape[0]
        s = s % m
        if s == 0:
            return a
        amt = (m - s) if roll_matches_jnp else s
        return pltpu.roll(a, shift=amt, axis=0)

    def conv1x1(a, w_ref, b_ref):
        acc = jnp.dot(a.astype(_BF16), w_ref[...], preferred_element_type=_F32)
        return jnp.maximum(acc + b_ref[...], 0.0)

    def conv1x1_cat(a_skip, a_up, wa_ref, wb_ref, b_ref):
        # 1x1 conv of channel-concat([skip, up]) without materializing the concat.
        acc = jnp.dot(a_skip.astype(_BF16), wa_ref[...], preferred_element_type=_F32)
        acc = acc + jnp.dot(a_up.astype(_BF16), wb_ref[...], preferred_element_type=_F32)
        return jnp.maximum(acc + b_ref[...], 0.0)

    def conv3x3(a, w_ref, b_ref, h, w, relu=True):
        # a: (M, Cin) f32, flattened as m = n*h*w_row-major; w_ref: (9, Cin, Cout) bf16.
        m = a.shape[0]
        cout = w_ref.shape[-1]
        row = jax.lax.broadcasted_iota(jnp.int32, (m, 1), 0)
        hh = (row // w) % h
        ww = row % w
        acc = jnp.zeros((m, cout), _F32) + b_ref[...]
        for ky in range(3):
            for kx in range(3):
                s = (ky - 1) * w + (kx - 1)
                valid = ((hh + (ky - 1) >= 0) & (hh + (ky - 1) < h)
                         & (ww + (kx - 1) >= 0) & (ww + (kx - 1) < w))
                tap = jnp.where(valid, shift_rows(a, s), 0.0).astype(_BF16)
                acc = acc + jnp.dot(tap, w_ref[ky * 3 + kx],
                                    preferred_element_type=_F32)
        if relu:
            acc = jnp.maximum(acc, 0.0)
        return acc

    def enc_block(a, pre, h, w):
        a1 = conv1x1(a, p[pre + "_w1"], p[pre + "_b1"])
        return conv3x3(a1, p[pre + "_w2"], p[pre + "_b2"], h, w)

    def dec_block(a_skip, a_up, pre, h, w):
        a1 = conv1x1_cat(a_skip, a_up, p[pre + "_w1a"], p[pre + "_w1b"],
                         p[pre + "_b1"])
        return conv3x3(a1, p[pre + "_w2"], p[pre + "_b2"], h, w)

    def maxpool(a, s_ref, w):
        # 2x2 max pool: max over {m, m+1, m+W, m+W+1}, then exact 0/1 row selection.
        b = jnp.maximum(a, shift_rows(a, 1))
        b = jnp.maximum(b, shift_rows(a, w))
        b = jnp.maximum(b, shift_rows(a, w + 1))
        return jnp.dot(s_ref[...], b.astype(_BF16), preferred_element_type=_F32)

    def deconv(a, w_ref, b_ref, e_ref):
        # ConvTranspose2d(k=2, s=2) + ReLU.  w_ref: (4, Cin, Cout); e_ref: (4, Mo, Mi).
        xb = a.astype(_BF16)
        mo = e_ref.shape[1]
        cout = w_ref.shape[-1]
        out = jnp.zeros((mo, cout), _F32)
        for k in range(4):
            pk = jnp.dot(xb, w_ref[k], preferred_element_type=_F32) + b_ref[...]
            pk = jnp.maximum(pk, 0.0)
            out = out + jnp.dot(e_ref[k], pk.astype(_BF16),
                                preferred_element_type=_F32)
        return out

    h1, w1 = H, W
    h2, w2 = H // 2, W // 2
    h3, w3 = H // 4, W // 4
    h4, w4 = H // 8, W // 8

    x0 = x_ref[...].astype(_F32)

    # Encoder
    f1 = enc_block(x0, "block1", h1, w1)
    f2 = enc_block(maxpool(f1, p["pool1_s"], w1), "block2", h2, w2)
    f3 = enc_block(maxpool(f2, p["pool2_s"], w2), "block3", h3, w3)
    f4 = enc_block(maxpool(f3, p["pool3_s"], w3), "block4", h4, w4)

    # Decoder (skip concats folded into split 1x1 weights)
    f4up = deconv(f4, p["up2_w"], p["up2_b"], p["up2_e"])
    f7 = dec_block(f3, f4up, "block7", h3, w3)
    f7up = deconv(f7, p["up3_w"], p["up3_b"], p["up3_e"])
    f8 = dec_block(f2, f7up, "block8", h2, w2)
    f8up = deconv(f8, p["up4_w"], p["up4_b"], p["up4_e"])
    f9 = dec_block(f1, f8up, "block9", h1, w1)

    out_ref[...] = conv3x3(f9, p["conv9_w"], p["conv9_b"], h1, w1, relu=False)


# ---------------------------------------------------------------------------
# Host-side wrapper
# ---------------------------------------------------------------------------
def unet2dres_forward(packed, x_nchw, *, roll_matches_jnp):
    n, cin, hh, ww = x_nchw.shape
    m = n * hh * ww
    n_class = packed["conv9_b"].shape[-1]
    xf = jnp.transpose(x_nchw, (0, 2, 3, 1)).reshape(m, cin).astype(_F32)
    arrays = [packed[k] for k in _PARAM_NAMES]

    kernel = functools.partial(_unet2dres_kernel, names=_PARAM_NAMES,
                               H=hh, W=ww, roll_matches_jnp=roll_matches_jnp)
    out = pl.pallas_call(
        kernel,
        out_shape=jax.ShapeDtypeStruct((m, n_class), _F32),
        grid=(1,),
        in_specs=[_full_spec(xf.shape)] + [_full_spec(a.shape) for a in arrays],
        out_specs=_full_spec((m, n_class)),
        compiler_params=pltpu.CompilerParams(
            dimension_semantics=("arbitrary",),
            vmem_limit_bytes=48 * 1024 * 1024,
        ),
    )(xf, *arrays)
    # (M, n_class) -> NCHW
    return jnp.transpose(out.reshape(n, hh, ww, n_class), (0, 3, 1, 2))


def _probe_roll_convention():
    """One-off check of pltpu.roll direction so tap shifts are convention-proof."""
    base = jnp.broadcast_to(jnp.arange(8, dtype=_F32)[:, None], (8, 128))

    def k(x_ref, o_ref):
        o_ref[...] = pltpu.roll(x_ref[...], shift=1, axis=0)

    out = pl.pallas_call(
        k, out_shape=jax.ShapeDtypeStruct((8, 128), _F32))(base)
    # jnp.roll convention => row 0 now holds the old last row (value 7.0).
    return bool(jax.device_get(out)[0, 0] == 7.0)


# ---------------------------------------------------------------------------
# Structural 0/1 matrices (pool row-selection, deconv row-expansion)
# ---------------------------------------------------------------------------
def _pool_select_matrix(n, h, w):
    ho, wo = h // 2, w // 2
    mo, mi = n * ho * wo, n * h * w
    sel = np.zeros((mo, mi), np.float32)
    mo_idx = np.arange(mo)
    nn = mo_idx // (ho * wo)
    rem = mo_idx % (ho * wo)
    base = nn * h * w + (rem // wo) * 2 * w + (rem % wo) * 2
    sel[mo_idx, base] = 1.0
    return jnp.asarray(sel, _BF16)


def _deconv_expand_matrix(n, h, w):
    mi = n * h * w
    mo = 4 * mi
    exp = np.zeros((4, mo, mi), np.float32)
    mi_idx = np.arange(mi)
    nn = mi_idx // (h * w)
    rem = mi_idx % (h * w)
    yy, xx = rem // w, rem % w
    for dy in range(2):
        for dx in range(2):
            mo_idx = (nn * (2 * h) * (2 * w)
                      + (2 * yy + dy) * (2 * w) + (2 * xx + dx))
            exp[dy * 2 + dx, mo_idx, mi_idx] = 1.0
    return jnp.asarray(exp, _BF16)


# ---------------------------------------------------------------------------
# Parameter construction (deterministic, torch layouts) + packing
# ---------------------------------------------------------------------------
def _conv_params(key, cout, cin, k):
    kw, kb = jax.random.split(key)
    std = (2.0 / (cin * k * k)) ** 0.5
    w = std * jax.random.normal(kw, (cout, cin, k, k), jnp.float32)
    b = 0.01 * jax.random.normal(kb, (cout,), jnp.float32)
    return w, b


def _deconv_params(key, cin, cout):
    kw, kb = jax.random.split(key)
    std = (2.0 / (cin * 4)) ** 0.5
    w = std * jax.random.normal(kw, (cin, cout, 2, 2), jnp.float32)
    b = 0.01 * jax.random.normal(kb, (cout,), jnp.float32)
    return w, b


def init_unet2dres_params(key, in_chns, ft_chns, n_class):
    params = {}
    block_io = {
        "block1": (in_chns, ft_chns[0]),
        "block2": (ft_chns[0], ft_chns[1]),
        "block3": (ft_chns[1], ft_chns[2]),
        "block4": (ft_chns[2], ft_chns[3]),
        "block7": (ft_chns[2] * 2, ft_chns[2]),
        "block8": (ft_chns[1] * 2, ft_chns[1]),
        "block9": (ft_chns[0] * 2, ft_chns[0]),
    }
    for name, (cin, cout) in block_io.items():
        key, k1, k2 = jax.random.split(key, 3)
        w1, b1 = _conv_params(k1, cout, cin, 1)   # UNetBlock.conv1 (1x1)
        w2, b2 = _conv_params(k2, cout, cout, 3)  # UNetBlock.conv2 (3x3)
        params[name] = {"w1": w1, "b1": b1, "w2": w2, "b2": b2}

    up_io = {"up2": (ft_chns[3], ft_chns[2]),
             "up3": (ft_chns[2], ft_chns[1]),
             "up4": (ft_chns[1], ft_chns[0])}
    for name, (cin, cout) in up_io.items():
        key, k1 = jax.random.split(key)
        w, b = _deconv_params(k1, cin, cout)
        params[name] = {"w": w, "b": b}

    key, k1 = jax.random.split(key)
    w9, b9 = _conv_params(k1, n_class, ft_chns[0], 3)  # final Conv2d head
    params["conv9"] = {"w": w9, "b": b9}
    return params


def pack_params(params, n, h, w, ft_chns):
    def w1x1(wt):  # (Cout, Cin, 1, 1) -> (Cin, Cout)
        return jnp.transpose(wt[:, :, 0, 0], (1, 0)).astype(_BF16)

    def w3x3(wt):  # (Cout, Cin, 3, 3) -> (9, Cin, Cout), k = ky*3 + kx
        cout, cin = wt.shape[0], wt.shape[1]
        return jnp.transpose(wt, (2, 3, 1, 0)).reshape(9, cin, cout).astype(_BF16)

    def bias(bv):
        return bv.reshape(1, -1).astype(_F32)

    packed = {}
    for name in ("block1", "block2", "block3", "block4"):
        bp = params[name]
        packed[name + "_w1"] = w1x1(bp["w1"])
        packed[name + "_b1"] = bias(bp["b1"])
        packed[name + "_w2"] = w3x3(bp["w2"])
        packed[name + "_b2"] = bias(bp["b2"])

    skip_chns = {"block7": ft_chns[2], "block8": ft_chns[1], "block9": ft_chns[0]}
    for name in ("block7", "block8", "block9"):
        bp = params[name]
        wfull = w1x1(bp["w1"])                 # (Cskip + Cup, Cout)
        cs = skip_chns[name]
        packed[name + "_w1a"] = wfull[:cs]     # applies to the skip tensor
        packed[name + "_w1b"] = wfull[cs:]     # applies to the upsampled tensor
        packed[name + "_b1"] = bias(bp["b1"])
        packed[name + "_w2"] = w3x3(bp["w2"])
        packed[name + "_b2"] = bias(bp["b2"])

    for name in ("up2", "up3", "up4"):
        wt = params[name]["w"]                 # (Cin, Cout, 2, 2)
        packed[name + "_w"] = jnp.transpose(wt, (2, 3, 0, 1)).reshape(
            4, wt.shape[0], wt.shape[1]).astype(_BF16)
        packed[name + "_b"] = bias(params[name]["b"])

    packed["conv9_w"] = w3x3(params["conv9"]["w"])
    packed["conv9_b"] = bias(params["conv9"]["b"])

    packed["pool1_s"] = _pool_select_matrix(n, h, w)
    packed["pool2_s"] = _pool_select_matrix(n, h // 2, w // 2)
    packed["pool3_s"] = _pool_select_matrix(n, h // 4, w // 4)
    packed["up2_e"] = _deconv_expand_matrix(n, h // 8, w // 8)
    packed["up3_e"] = _deconv_expand_matrix(n, h // 4, w // 4)
    packed["up4_e"] = _deconv_expand_matrix(n, h // 2, w // 2)
    return packed


# ---------------------------------------------------------------------------
if __name__ == "__main__":
    N, C_IN, H, W = 2, 4, 16, 16
    FT_CHNS = [8, 16, 32, 64]
    N_CLASS = 2

    root = jax.random.PRNGKey(0)
    key_x, key_p = jax.random.split(root)

    x = jax.random.normal(key_x, (N, C_IN, H, W), jnp.float32)  # NCHW like torch
    params = init_unet2dres_params(key_p, C_IN, FT_CHNS, N_CLASS)
    packed = pack_params(params, N, H, W, FT_CHNS)

    roll_conv = _probe_roll_convention()
    fwd = jax.jit(functools.partial(unet2dres_forward,
                                    roll_matches_jnp=roll_conv))
    out = jax.block_until_ready(fwd(packed, x))

    assert out.shape == (N, N_CLASS, H, W), out.shape
    assert bool(jnp.all(jnp.isfinite(out)))
    print("KERNEL_OK")
</pallas_src>

<mosaic_0001>
module attributes {stable_mosaic.version = 11 : i64} {
  func.func @k(%arg0: memref<8x128xf32, #tpu.memory_space<vmem>>, %arg1: memref<8x128xf32, #tpu.memory_space<vmem>>) attributes {dimension_semantics = [], scalar_prefetch = 0 : i64, scratch_operands = 0 : i64, tpu.core_type = #tpu.core_type<tc>} {
    %c0 = arith.constant 0 : index
    %c0_0 = arith.constant 0 : index
    %0 = vector.load %arg0[%c0, %c0_0] : memref<8x128xf32, #tpu.memory_space<vmem>>, vector<8x128xf32>
    %c1_i32 = arith.constant 1 : i32
    %1 = tpu.dynamic_rotate %0 by %c1_i32 dim 0 : vector<8x128xf32>, i32 -> vector<8x128xf32>
    %c0_1 = arith.constant 0 : index
    %c0_2 = arith.constant 0 : index
    %2 = vector.load %arg1[%c0_1, %c0_2] : memref<8x128xf32, #tpu.memory_space<vmem>>, vector<8x128xf32>
    tpu.vector_store %arg1[%c0_1, %c0_2], %1 {strides = array<i32>} : memref<8x128xf32, #tpu.memory_space<vmem>>, vector<8x128xf32>,
    return
  }
}

</mosaic_0001>

<bundles_post_ra>
// kernel: tpu_custom_call.1
= control target key start
LH: loop header
LB: loop body
LE: loop exit
PB: predicated region body
PF: predicated region fallthrough
CT: control target
= control target key end

     0   :  { %6 = vsyncpa [#allocation3], 0  ;;  %s115_s0 = inlined_call_operand.hbm [shape: f32[8,128], index: 0, kind: input, shape index: {}]   ;;  %s116_s1 = inlined_call_operand.hbm [shape: f32[8,128], index: 1, kind: output, shape index: {}]  }
   0x1   :  { %7 = vsyncpa [#allocation4], 0  ;;  %s13_s8 = sshll.u32 %s115_s0, 4  ;;  %s97_s9 = smov [#allocation2]   ;;  %s14_s8 = int_to_ptr.hbm [resolvable:$true] %s13_s8 }
   0x2   :  { %s15_s10 = sshll.u32 %s97_s9, 4  ;;  %s16_s10 = int_to_ptr.vmem [resolvable:$true] %s15_s10 }
   0x3   :  { %18 = dma.hbm_to_vmem [thread:$0]  %s14_s8, 128, %s16_s10, [#allocation3]  }
   0x4   :  { %93 = dma.done.wait [#allocation3], 128  }
   0x5   :  { %94 = vsyncadd [#allocation3], 4294967168  ;;  %s98_s11 = smov [#allocation5]   ;;  %s33_s15 = sshll.u32 %s116_s1, 4  ;;  %v23_v0 = vld [vmem:[#allocation2] sm:$0xff]  ;;  %s34_s15 = int_to_ptr.hbm [resolvable:$true] %s33_s15 }
   0x6   :  { %s31_s12 = sshll.u32 %s98_s11, 4  ;;  %v24_v1 = vrot.slane %v23_v0, 7  ;;  %s32_s12 = int_to_ptr.vmem [resolvable:$true] %s31_s12 }
   0x8   :  { %25 = vst [vmem:[#allocation5] sm:$0xff] %v24_v1 }
   0x9   :  { %36 = dma.vmem_to_hbm [thread:$0]  %s32_s12, 128, %s34_s15, [#allocation4]  }
   0xa   :  { %95 = dma.done.wait [#allocation4], 128  }
   0xb   :  { %96 = vsyncadd [#allocation4], 4294967168 }
   0xc   :  { %41 = vsyncpa [#allocation3], 1 }
   0xd   :  { %42 = vsyncpa [#allocation4], 1 }

</bundles_post_ra>
